<compile_context>
chip_gen: v5e
topology: v5e:2x2
jax: 0.10.0
libtpu: 0.0.40
codegen_flags: <defaults>
</compile_context>

<pallas_src>
import functools

import jax
import jax.numpy as jnp
from jax import lax
from jax.experimental import pallas as pl
from jax.experimental.pallas import tpu as pltpu

EPS = 1e-5
INV_SQRT2 = 0.7071067811865476
_VMEM_LIMIT = 48 * 1024 * 1024  # fits v5e/v6e (128 MiB) and v7x (64 MiB) physical VMEM


def _cdiv(a, b):
    return -(-a // b)


# --------------------------------------------------------------------------- #
# Kernel helpers
# --------------------------------------------------------------------------- #
def _tap_matmul(x, w9, strip, W, C, dil, halo, compute_dtype):
    """3x3 (dilated) conv over a halo'd row strip as matmul(s).

    x  : (strip + 2*halo, W + 2*halo, C) activation tile (already loaded value)
    w9 : (9*C, Cout) tap-stacked weight (value, already in compute_dtype)
    returns (strip*W, Cout) float32
    """
    taps = []
    for ky in range(3):
        for kx in range(3):
            y0 = halo + (ky - 1) * dil
            x0 = halo + (kx - 1) * dil
            taps.append(x[y0:y0 + strip, x0:x0 + W, :].reshape(strip * W, C))
    if C < 128:
        # Small-channel regime: stack the 9 taps along K so the MXU sees one
        # (rows, 9*C) x (9*C, Cout) matmul instead of 9 underfilled pushes.
        xcol = jnp.concatenate(taps, axis=-1).astype(compute_dtype)
        return jnp.dot(xcol, w9, preferred_element_type=jnp.float32)
    # Large-channel regime: K=C already fills the MXU; accumulate per tap
    # (avoids a 9x im2col VMEM blowup).
    acc = jnp.dot(taps[0].astype(compute_dtype), w9[0:C],
                  preferred_element_type=jnp.float32)
    for t in range(1, 9):
        acc = acc + jnp.dot(taps[t].astype(compute_dtype), w9[t * C:(t + 1) * C],
                            preferred_element_type=jnp.float32)
    return acc


# --------------------------------------------------------------------------- #
# Pallas kernels
# --------------------------------------------------------------------------- #
def _matmul_bn_relu_kernel(x_ref, w_ref, s_ref, b_ref, o_ref, *, compute_dtype):
    # x: (TM, Cin), w: (Cin, Cout), s/b: (1, Cout), o: (TM, Cout)
    y = jnp.dot(x_ref[...].astype(compute_dtype), w_ref[...],
                preferred_element_type=jnp.float32)
    y = y * s_ref[...] + b_ref[...]
    o_ref[...] = jnp.maximum(y, 0.0).astype(o_ref.dtype)


def _conv3x3_bn_relu_kernel(xs_ref, w_ref, s_ref, b_ref, o_ref,
                            *, strip, W, C, dil, compute_dtype):
    # xs: (1, strip+2*dil, W+2*dil, C); w: (9*C, Cout); o: (1, strip, W*Cout)
    x = xs_ref[0]
    cout = w_ref.shape[-1]
    y = _tap_matmul(x, w_ref[...], strip, W, C, dil, dil, compute_dtype)
    y = jnp.maximum(y * s_ref[...] + b_ref[...], 0.0)
    o_ref[0] = y.reshape(strip, W * cout).astype(o_ref.dtype)   # lane-dense store


def _dwr_tail_kernel(xs_ref, w3_ref, sb3_ref, w1_ref, sb1_ref, r_ref, sb2_ref,
                     o_ref, *, strip, W, C, halo, compute_dtype):
    # Fused: (d1 | d3 | d5 branch conv+BN+ReLU) -> 1x1 conv (+BN+ReLU) on the
    # implicit concat -> + residual -> outer BN -> exact GELU.
    x = xs_ref[0]                                    # (strip+2*halo, W+2*halo, C)
    acc = jnp.zeros((strip * W, C), jnp.float32)
    for bi, dil in enumerate((1, 3, 5)):
        z = _tap_matmul(x, w3_ref[bi], strip, W, C, dil, halo, compute_dtype)
        z = z * sb3_ref[2 * bi:2 * bi + 1, :] + sb3_ref[2 * bi + 1:2 * bi + 2, :]
        z = jnp.maximum(z, 0.0)                      # x1 / x2 / x3 (never hit HBM)
        acc = acc + jnp.dot(z.astype(compute_dtype), w1_ref[bi],
                            preferred_element_type=jnp.float32)
    y = jnp.maximum(acc * sb1_ref[0:1, :] + sb1_ref[1:2, :], 0.0)   # conv_1x1+BN+ReLU
    y = y + r_ref[0].reshape(strip * W, C)                          # + residual
    y = y * sb2_ref[0:1, :] + sb2_ref[1:2, :]                       # outer BN
    y = 0.5 * y * (1.0 + lax.erf(y * INV_SQRT2))                    # exact GELU
    o_ref[0] = y.reshape(strip, W * C).astype(o_ref.dtype)          # lane-dense store


# --------------------------------------------------------------------------- #
# Pallas wrappers
# --------------------------------------------------------------------------- #
def conv1x1_bn_relu(x2d, w, scale, bias, *, tile_m=512, compute_dtype=jnp.float32):
    M, Cin = x2d.shape
    Cout = w.shape[1]
    tm = M if M <= tile_m else tile_m            # tile_m must be a multiple of 8
    grid_m = _cdiv(M, tm)
    kern = functools.partial(_matmul_bn_relu_kernel, compute_dtype=compute_dtype)
    return pl.pallas_call(
        kern,
        out_shape=jax.ShapeDtypeStruct((M, Cout), jnp.float32),
        grid=(grid_m,),
        in_specs=[
            pl.BlockSpec((tm, Cin), lambda i: (i, 0)),
            pl.BlockSpec((Cin, Cout), lambda i: (0, 0)),
            pl.BlockSpec((1, Cout), lambda i: (0, 0)),
            pl.BlockSpec((1, Cout), lambda i: (0, 0)),
        ],
        out_specs=pl.BlockSpec((tm, Cout), lambda i: (i, 0)),
        compiler_params=pltpu.CompilerParams(
            dimension_semantics=("parallel",),
            vmem_limit_bytes=_VMEM_LIMIT),
    )(x2d, w.astype(compute_dtype), scale.reshape(1, -1), bias.reshape(1, -1))


def _make_row_strips(x_nhwc, halo, strip):
    """Pad ONCE to `halo`, then gather overlapping row strips.

    (B, H, W, C) -> ((B*ns, strip + 2*halo, W + 2*halo, C), ns)
    """
    B, H, W, C = x_nhwc.shape
    ns = _cdiv(H, strip)
    extra = ns * strip - H
    xp = jnp.pad(x_nhwc, ((0, 0), (halo, halo + extra), (halo, halo), (0, 0)))
    rows = jnp.arange(ns)[:, None] * strip + jnp.arange(strip + 2 * halo)[None, :]
    xs = xp[:, rows]                                  # (B, ns, strip+2h, W+2h, C)
    return xs.reshape(B * ns, strip + 2 * halo, W + 2 * halo, C), ns


def conv3x3_bn_relu(x_nhwc, w, scale, bias, *, dil=1, row_strip=32,
                    compute_dtype=jnp.float32):
    B, H, W, C = x_nhwc.shape
    Cout = w.shape[-1]
    strip = H if H <= row_strip else row_strip        # row_strip: multiple of 8
    xs, ns = _make_row_strips(x_nhwc, dil, strip)
    w9 = w.reshape(9 * C, Cout).astype(compute_dtype)
    kern = functools.partial(_conv3x3_bn_relu_kernel, strip=strip, W=W, C=C,
                             dil=dil, compute_dtype=compute_dtype)
    out = pl.pallas_call(
        kern,
        out_shape=jax.ShapeDtypeStruct((B, H, W * Cout), jnp.float32),
        grid=(B, ns),
        in_specs=[
            pl.BlockSpec((1, strip + 2 * dil, W + 2 * dil, C),
                         lambda b, s: (b * ns + s, 0, 0, 0)),
            pl.BlockSpec((9 * C, Cout), lambda b, s: (0, 0)),
            pl.BlockSpec((1, Cout), lambda b, s: (0, 0)),
            pl.BlockSpec((1, Cout), lambda b, s: (0, 0)),
        ],
        out_specs=pl.BlockSpec((1, strip, W * Cout), lambda b, s: (b, s, 0)),
        compiler_params=pltpu.CompilerParams(
            dimension_semantics=("parallel", "parallel"),
            vmem_limit_bytes=_VMEM_LIMIT),
    )(xs, w9, scale.reshape(1, -1), bias.reshape(1, -1))
    return out.reshape(B, H, W, Cout)


def dwr_tail(x_nhwc, y_resid_nhwc, w3_stack, sb3, w1_stack, sb1, sb2,
             *, row_strip=32, compute_dtype=jnp.float32):
    B, H, W, C = x_nhwc.shape
    halo = 5                                          # max dilation halo, padded once
    strip = H if H <= row_strip else row_strip
    xs, ns = _make_row_strips(x_nhwc, halo, strip)
    r = y_resid_nhwc.reshape(B, H, W * C)             # lane-dense residual view (free)
    kern = functools.partial(_dwr_tail_kernel, strip=strip, W=W, C=C,
                             halo=halo, compute_dtype=compute_dtype)
    out = pl.pallas_call(
        kern,
        out_shape=jax.ShapeDtypeStruct((B, H, W * C), jnp.float32),
        grid=(B, ns),
        in_specs=[
            pl.BlockSpec((1, strip + 2 * halo, W + 2 * halo, C),
                         lambda b, s: (b * ns + s, 0, 0, 0)),
            pl.BlockSpec((3, 9 * C, C), lambda b, s: (0, 0, 0)),
            pl.BlockSpec((6, C), lambda b, s: (0, 0)),
            pl.BlockSpec((3, C, C), lambda b, s: (0, 0, 0)),
            pl.BlockSpec((2, C), lambda b, s: (0, 0)),
            pl.BlockSpec((1, strip, W * C), lambda b, s: (b, s, 0)),
            pl.BlockSpec((2, C), lambda b, s: (0, 0)),
        ],
        out_specs=pl.BlockSpec((1, strip, W * C), lambda b, s: (b, s, 0)),
        compiler_params=pltpu.CompilerParams(
            dimension_semantics=("parallel", "parallel"),
            vmem_limit_bytes=_VMEM_LIMIT),
    )(xs, w3_stack.astype(compute_dtype), sb3, w1_stack.astype(compute_dtype),
      sb1, r, sb2)
    return out.reshape(B, H, W, C)


# --------------------------------------------------------------------------- #
# Parameters + forward
# --------------------------------------------------------------------------- #
def _fold_bn(conv_bias, gamma, beta, mean, var):
    scale = gamma / jnp.sqrt(var + EPS)
    bias = beta + (conv_bias - mean) * scale
    return scale, bias


def init_params(key, cin, cout):
    keys = iter(jax.random.split(key, 64))

    def w(shape, s=0.1):
        return jax.random.normal(next(keys), shape, jnp.float32) * s

    def bn(c):
        return (jax.random.uniform(next(keys), (c,), jnp.float32, 0.5, 1.5),  # gamma
                w((c,)),                                                      # beta
                w((c,)),                                                      # running_mean
                jax.random.uniform(next(keys), (c,), jnp.float32, 0.5, 1.5))  # running_var

    p = {}
    p['conv_w'] = w((cin, cout));        p['conv_b'] = w((cout,)); p['conv_bn'] = bn(cout)
    p['d3_w'] = w((3, 3, cout, cout));   p['d3_b'] = w((cout,));   p['d3_bn'] = bn(cout)
    p['d1_w'] = w((3, 3, cout, cout));   p['d1_b'] = w((cout,));   p['d1_bn'] = bn(cout)
    p['dd3_w'] = w((3, 3, cout, cout));  p['dd3_b'] = w((cout,));  p['dd3_bn'] = bn(cout)
    p['dd5_w'] = w((3, 3, cout, cout));  p['dd5_b'] = w((cout,));  p['dd5_bn'] = bn(cout)
    p['c1_w'] = w((3 * cout, cout));     p['c1_b'] = w((cout,));   p['c1_bn'] = bn(cout)
    p['out_bn'] = bn(cout)
    return p


def dwrseg_conv_forward(x_nchw, p, *, tile_m=512, row_strip=32,
                        compute_dtype=jnp.float32):
    # TODO(synk): NCHW<->NHWC transposes kept only to match the PyTorch interface;
    # keep NHWC end-to-end if the caller allows (saves two HBM passes).
    x = jnp.transpose(x_nchw, (0, 2, 3, 1)).astype(jnp.float32)  # NHWC
    B, H, W, Cin = x.shape
    C = p['conv_b'].shape[0]

    # stage A : self.conv  (1x1 conv + BN + ReLU), M-tiled matmul
    s, b = _fold_bn(p['conv_b'], *p['conv_bn'])
    y = conv1x1_bn_relu(x.reshape(B * H * W, Cin), p['conv_w'], s, b,
                        tile_m=tile_m, compute_dtype=compute_dtype)
    y = y.reshape(B, H, W, C)

    # stage B : DWR stem conv_3x3 (3x3, pad=1) + BN + ReLU
    s, b = _fold_bn(p['d3_b'], *p['d3_bn'])
    x_ = conv3x3_bn_relu(y, p['d3_w'], s, b, dil=1, row_strip=row_strip,
                         compute_dtype=compute_dtype)

    # stage C : fused (d1 | d3 | d5) branches + 1x1 merge + residual + BN + GELU
    s_d1, b_d1 = _fold_bn(p['d1_b'], *p['d1_bn'])
    s_d3, b_d3 = _fold_bn(p['dd3_b'], *p['dd3_bn'])
    s_d5, b_d5 = _fold_bn(p['dd5_b'], *p['dd5_bn'])
    sb3 = jnp.stack([s_d1, b_d1, s_d3, b_d3, s_d5, b_d5], axis=0)      # (6, C)
    w3 = jnp.stack([p['d1_w'].reshape(9 * C, C),
                    p['dd3_w'].reshape(9 * C, C),
                    p['dd5_w'].reshape(9 * C, C)], axis=0)             # (3, 9C, C)
    s1, b1 = _fold_bn(p['c1_b'], *p['c1_bn'])
    sb1 = jnp.stack([s1, b1], axis=0)                                  # (2, C)
    g2, be2, m2, v2 = p['out_bn']
    s2 = g2 / jnp.sqrt(v2 + EPS)
    sb2 = jnp.stack([s2, be2 - m2 * s2], axis=0)                       # (2, C)
    w1 = p['c1_w'].reshape(3, C, C)                                    # cat order x1|x2|x3

    out = dwr_tail(x_, y, w3, sb3, w1, sb1, sb2,
                   row_strip=row_strip, compute_dtype=compute_dtype)
    return jnp.transpose(out, (0, 3, 1, 2))                            # back to NCHW


# --------------------------------------------------------------------------- #
# Pure-JAX reference (for correctness check)
# --------------------------------------------------------------------------- #
def _ref_conv(x, w, b, dil, pad):
    y = lax.conv_general_dilated(x, w, window_strides=(1, 1),
                                 padding=((pad, pad), (pad, pad)),
                                 rhs_dilation=(dil, dil),
                                 dimension_numbers=('NHWC', 'HWIO', 'NHWC'))
    return y + b


def _ref_bn(x, gamma, beta, mean, var):
    return (x - mean) / jnp.sqrt(var + EPS) * gamma + beta


def reference_forward(x_nchw, p):
    x = jnp.transpose(x_nchw, (0, 2, 3, 1)).astype(jnp.float32)
    cin = x.shape[-1]
    cout = p['conv_b'].shape[0]

    def cbr(x, w, b, bnp, dil=1, pad=0):
        return jnp.maximum(_ref_bn(_ref_conv(x, w, b, dil, pad), *bnp), 0.0)

    y = cbr(x, p['conv_w'].reshape(1, 1, cin, cout), p['conv_b'], p['conv_bn'])
    x_ = cbr(y, p['d3_w'], p['d3_b'], p['d3_bn'], 1, 1)
    x1 = cbr(x_, p['d1_w'], p['d1_b'], p['d1_bn'], 1, 1)
    x2 = cbr(x_, p['dd3_w'], p['dd3_b'], p['dd3_bn'], 3, 3)
    x3 = cbr(x_, p['dd5_w'], p['dd5_b'], p['dd5_bn'], 5, 5)
    cat = jnp.concatenate([x1, x2, x3], axis=-1)
    z = cbr(cat, p['c1_w'].reshape(1, 1, 3 * cout, cout), p['c1_b'], p['c1_bn']) + y
    z = _ref_bn(z, *p['out_bn'])
    z = 0.5 * z * (1.0 + lax.erf(z * INV_SQRT2))  # exact GELU (PyTorch nn.GELU())
    return jnp.transpose(z, (0, 3, 1, 2))


# --------------------------------------------------------------------------- #
if __name__ == "__main__":
    key = jax.random.PRNGKey(0)
    k_x, k_p = jax.random.split(key)

    B, Cin, Cout, H, W = 2, 4, 8, 16, 16
    x = jax.random.normal(k_x, (B, Cin, H, W), jnp.float32)
    params = init_params(k_p, Cin, Cout)

    # small tiles so the test exercises multi-block grids on every kernel
    out = dwrseg_conv_forward(x, params, tile_m=128, row_strip=8)
    out = jax.block_until_ready(out)

    ref = jax.block_until_ready(reference_forward(x, params))
    assert out.shape == (B, Cout, H, W)
    assert jnp.allclose(out, ref, rtol=2e-3, atol=2e-3), "mismatch vs pure-JAX reference"

    print("KERNEL_OK")
</pallas_src>

<mosaic_0001>
module attributes {stable_mosaic.version = 11 : i64} {
  func.func @_matmul_bn_relu_kernel(%arg0: i32, %arg1: memref<128x4xf32, #tpu.memory_space<vmem>>, %arg2: memref<4x8xf32, #tpu.memory_space<vmem>>, %arg3: memref<1x8xf32, #tpu.memory_space<vmem>>, %arg4: memref<1x8xf32, #tpu.memory_space<vmem>>, %arg5: memref<128x8xf32, #tpu.memory_space<vmem>>) attributes {dimension_semantics = [#tpu.dimension_semantics<parallel>], iteration_bounds = array<i64: 4>, scalar_prefetch = 0 : i64, scratch_operands = 0 : i64, tpu.core_type = #tpu.core_type<tc>, window_params = [{transform_indices = @transform_0, window_bounds = array<i64: 128, 4>}, {pipeline_mode = #tpu.pipeline_mode<synchronous>, transform_indices = @transform_1, window_bounds = array<i64: 4, 8>}, {pipeline_mode = #tpu.pipeline_mode<synchronous>, transform_indices = @transform_2, window_bounds = array<i64: 1, 8>}, {pipeline_mode = #tpu.pipeline_mode<synchronous>, transform_indices = @transform_3, window_bounds = array<i64: 1, 8>}, {transform_indices = @transform_4, window_bounds = array<i64: 128, 8>}]} {
    %c0 = arith.constant 0 : index
    %c0_0 = arith.constant 0 : index
    %0 = vector.load %arg1[%c0, %c0_0] : memref<128x4xf32, #tpu.memory_space<vmem>>, vector<128x4xf32>
    %c0_1 = arith.constant 0 : index
    %c0_2 = arith.constant 0 : index
    %1 = vector.load %arg2[%c0_1, %c0_2] : memref<4x8xf32, #tpu.memory_space<vmem>>, vector<4x8xf32>
    %cst = arith.constant dense<0.000000e+00> : vector<128x8xf32>
    %2 = tpu.matmul %0, %1, %cst {dimension_numbers = #tpu.dot_dimension_numbers<[1], [0], [0], [1], [0, 0, 1, 1], [], []>} : vector<128x4xf32>, vector<4x8xf32>, vector<128x8xf32> -> vector<128x8xf32>
    %c0_3 = arith.constant 0 : index
    %c0_4 = arith.constant 0 : index
    %3 = vector.load %arg3[%c0_3, %c0_4] : memref<1x8xf32, #tpu.memory_space<vmem>>, vector<1x8xf32>
    %4 = vector.broadcast %3 : vector<1x8xf32> to vector<128x8xf32>
    %5 = arith.mulf %2, %4 : vector<128x8xf32>
    %c0_5 = arith.constant 0 : index
    %c0_6 = arith.constant 0 : index
    %6 = vector.load %arg4[%c0_5, %c0_6] : memref<1x8xf32, #tpu.memory_space<vmem>>, vector<1x8xf32>
    %7 = vector.broadcast %6 : vector<1x8xf32> to vector<128x8xf32>
    %8 = arith.addf %5, %7 : vector<128x8xf32>
    %cst_7 = arith.constant 0.000000e+00 : f32
    %9 = vector.broadcast %cst_7 : f32 to vector<128x8xf32>
    %10 = arith.maximumf %8, %9 : vector<128x8xf32>
    %c0_8 = arith.constant 0 : index
    %c0_9 = arith.constant 0 : index
    %11 = vector.load %arg5[%c0_8, %c0_9] : memref<128x8xf32, #tpu.memory_space<vmem>>, vector<128x8xf32>
    tpu.vector_store %arg5[%c0_8, %c0_9], %10 {strides = array<i32>} : memref<128x8xf32, #tpu.memory_space<vmem>>, vector<128x8xf32>,
    return
  }
  func.func @transform_0(%arg0: i32) -> (i32, i32) {
    %c0_i32 = arith.constant 0 : i32
    %c0_i32_0 = arith.constant 0 : i32
    return %arg0, %c0_i32 : i32, i32
  }
  func.func @transform_1(%arg0: i32) -> (i32, i32) {
    %c0_i32 = arith.constant 0 : i32
    %c0_i32_0 = arith.constant 0 : i32
    %c0_i32_1 = arith.constant 0 : i32
    return %c0_i32, %c0_i32_0 : i32, i32
  }
  func.func @transform_2(%arg0: i32) -> (i32, i32) {
    %c0_i32 = arith.constant 0 : i32
    %c0_i32_0 = arith.constant 0 : i32
    %c0_i32_1 = arith.constant 0 : i32
    return %c0_i32, %c0_i32_0 : i32, i32
  }
  func.func @transform_3(%arg0: i32) -> (i32, i32) {
    %c0_i32 = arith.constant 0 : i32
    %c0_i32_0 = arith.constant 0 : i32
    %c0_i32_1 = arith.constant 0 : i32
    return %c0_i32, %c0_i32_0 : i32, i32
  }
  func.func @transform_4(%arg0: i32) -> (i32, i32) {
    %c0_i32 = arith.constant 0 : i32
    %c0_i32_0 = arith.constant 0 : i32
    return %arg0, %c0_i32 : i32, i32
  }
}

</mosaic_0001>

<bundles_post_ra>
// kernel: tpu_custom_call.1
= control target key start
LH: loop header
LB: loop body
LE: loop exit
PB: predicated region body
PF: predicated region fallthrough
CT: control target
= control target key end

     0   :  { %s539_s15 = smov 0   ;;  %s658_s0 = inlined_call_operand.vmem [shape: f32[512,4], index: 0, kind: input, shape index: {}]   ;;  %s659_s1 = inlined_call_operand.vmem [shape: f32[4,8], index: 1, kind: input, shape index: {}]   ;;  %s660_s2 = inlined_call_operand.vmem [shape: f32[1,8], index: 2, kind: input, shape index: {}]   ;;  %s661_s3 = inlined_call_operand.vmem [shape: f32[1,8], index: 3, kind: input, shape index: {}]   ;;  %s662_s4 = inlined_call_operand.vmem [shape: f32[512,8], index: 4, kind: output, shape index: {}]  }
   0x1 LB: > { %s465_s16 = sadd.s32 4294967295, %s512_s15   ;;  %p469_p0 = scmp.ge.s32.totalorder %s512_s15, 1  ;;  %s512_s15 = sphi %s539_s15, %s14_s15  }
   0x2   : > { %p163_p1 = scmp.lt.s32.totalorder %s512_s15, 5 }
   0x4   : > { %p164_p2 = pnand %p469_p0, %p163_p1 }
   0x5   : > { %s470_s19 = sshll.u32 (!%p164_p2), %s465_s16, 4 }
   0x6   : > { %167 = sbr.rel (%p164_p2) target bundleno = 179 (0xb3), region = 36  ;;  %p190_p3 = scmp.lt.s32.totalorder (!%p164_p2), %s470_s19, 63 }
   0xb   : > { %v217_v0 = vld [vmem:[%s659_s1] sm:$0xf]  ;;  %vm267_vm0 = vcmask 1043456   ;;  %s664_s19 = smov (!%p190_p3, %s470_s19), 63  ;;  %vm218_vm1 = vcmask 31744   ;;  %vm392_vm2 = vcmask 64512  }
   0xc   : > { %494 = vmatpush.msk.msra.mxu2 %vm267_vm0, %v217_v0  ;;  %495 = vmatpush.msk.msra.mxu3 %vm267_vm0, %v217_v0  ;;  %s471_s20 = sshll.u32 %s664_s19, 3  ;;  %v577_v17 = vld [vmem:[%s660_s2] ss:$0 sm:$0xff] }
   0xd   : > { %474 = vmatpush.msk.msra.mxu0 %vm267_vm0, %v217_v0  ;;  %493 = vmatpush.msk.msra.mxu1 %vm267_vm0, %v217_v0  ;;  %s193_s23 = scalar_lea.vmem %s658_s0, %s471_s20  ;;  %v582_v18 = vld [vmem:[%s661_s3] ss:$0 sm:$0xff]  ;;  %s593_s30 = scalar_lea.vmem %s662_s4, %s471_s20 }
   0xe   : > { %v209_v1 = vld [vmem:[%s193_s23 + $0x40] sm:$0xff]  ;;  %v210_v5 = vld [vmem:[%s193_s23 + $0x48] sm:$0xff]  ;;  %v211_v9 = vld [vmem:[%s193_s23 + $0x50] sm:$0xff] }
   0xf   : > { %v213_v2 = vld [vmem:[%s193_s23 + $0x60] sm:$0xff]  ;;  %483 = vmatmul.msk.f32.vlgmr.msra.gmra.mxu2 %vm218_vm1, %v209_v1  ;;  %v214_v6 = vld [vmem:[%s193_s23 + $0x68] sm:$0xff]  ;;  %v215_v10 = vld [vmem:[%s193_s23 + $0x70] sm:$0xff] }
  0x10   : > { %v201_v3 = vld [vmem:[%s193_s23] sm:$0xff]  ;;  %487 = vmatmul.msk.f32.vlgmr.msra.gmra.mxu3 %vm218_vm1, %v213_v2  ;;  %v202_v7 = vld [vmem:[%s193_s23 + $0x8] sm:$0xff]  ;;  %v203_v11 = vld [vmem:[%s193_s23 + $0x10] sm:$0xff] }
  0x11   : > { %v205_v4 = vld [vmem:[%s193_s23 + $0x20] sm:$0xff]  ;;  %475 = vmatmul.msk.f32.vlgmr.msra.gmra.mxu0 %vm218_vm1, %v201_v3  ;;  %v206_v8 = vld [vmem:[%s193_s23 + $0x28] sm:$0xff]  ;;  %v207_v12 = vld [vmem:[%s193_s23 + $0x30] sm:$0xff] }
  0x12   : > { %479 = vmatmul.msk.f32.vlgmr.msra.gmra.mxu1 %vm218_vm1, %v205_v4  ;;  %v212_v13 = vld [vmem:[%s193_s23 + $0x58] sm:$0xff] }
  0x13   : > { %v216_v14 = vld [vmem:[%s193_s23 + $0x78] sm:$0xff] }
  0x14   : > { %v204_v15 = vld [vmem:[%s193_s23 + $0x18] sm:$0xff] }
  0x15   : > { %v208_v16 = vld [vmem:[%s193_s23 + $0x38] sm:$0xff] }
  0x17   : > { %484 = vmatmul.msk.f32.gmra.mxu2 %vm218_vm1, %v210_v5 }
  0x18   : > { %488 = vmatmul.msk.f32.gmra.mxu3 %vm218_vm1, %v214_v6 }
  0x19   : > { %476 = vmatmul.msk.f32.gmra.mxu0 %vm218_vm1, %v202_v7 }
  0x1a   : > { %480 = vmatmul.msk.f32.gmra.mxu1 %vm218_vm1, %v206_v8 }
  0x1f   : > { %485 = vmatmul.msk.f32.gmra.mxu2 %vm218_vm1, %v211_v9 }
  0x20   : > { %489 = vmatmul.msk.f32.gmra.mxu3 %vm218_vm1, %v215_v10 }
  0x21   : > { %477 = vmatmul.msk.f32.gmra.mxu0 %vm218_vm1, %v203_v11 }
  0x22   : > { %481 = vmatmul.msk.f32.gmra.mxu1 %vm218_vm1, %v207_v12 }
  0x27   : > { %486 = vmatmul.msk.f32.gmra.mxu2 %vm218_vm1, %v212_v13 }
  0x28   : > { %490 = vmatmul.msk.f32.gmra.mxu3 %vm218_vm1, %v216_v14 }
  0x29   : > { %478 = vmatmul.msk.f32.gmra.mxu0 %vm218_vm1, %v204_v15 }
  0x2a   : > { %482 = vmatmul.msk.f32.gmra.mxu1 %vm218_vm1, %v208_v16 }
  0x8e   : > { %v288_v19 = vpop.f32.mrf.mxu0 }
  0x8f   : > { %v300_v20 = vpop.f32.mrf.mxu1  ;;  %v340_v21 = vmul.f32 %v577_v17, %v288_v19 }
  0x90   : > { %v344_v22 = vmul.f32 %v577_v17, %v300_v20 }
  0x91   : > { %v360_v23 = vadd.f32 %v582_v18, %v340_v21 }
  0x92   : > { %v364_v24 = vadd.f32 %v582_v18, %v344_v22  ;;  %v312_v27 = vpop.f32.mrf.mxu2 }
  0x93   : > { %v376_v25 = vmax.f32 %v360_v23, 0.0  ;;  %v324_v28 = vpop.f32.mrf.mxu3  ;;  %v348_v29 = vmul.f32 %v577_v17, %v312_v27 }
  0x94   : > { %v380_v26 = vmax.f32 %v364_v24, 0.0  ;;  %v352_v30 = vmul.f32 %v577_v17, %v324_v28 }
  0x95   : > { %393 = vst.msk [vmem:[%s593_s30] sm:$0xff] %vm392_vm2, %v376_v25  ;;  %v368_v31 = vadd.f32 %v582_v18, %v348_v29 }
  0x96   : > { %397 = vst.msk [vmem:[%s593_s30 + $0x20] sm:$0xff] %vm392_vm2, %v380_v26  ;;  %v372_v32 = vadd.f32 %v582_v18, %v352_v30  ;;  %v291_v33 = vpop.f32.mrf.mxu0 }
  0x97   : > { %v303_v34 = vpop.f32.mrf.mxu1  ;;  %v341_v35 = vmul.f32 %v577_v17, %v291_v33  ;;  %v384_v37 = vmax.f32 %v368_v31, 0.0 }
  0x98   : > { %v345_v36 = vmul.f32 %v577_v17, %v303_v34  ;;  %v388_v38 = vmax.f32 %v372_v32, 0.0 }
  0x99   : > { %v361_v39 = vadd.f32 %v582_v18, %v341_v35  ;;  %401 = vst.msk [vmem:[%s593_s30 + $0x40] sm:$0xff] %vm392_vm2, %v384_v37 }
  0x9a   : > { %v365_v40 = vadd.f32 %v582_v18, %v345_v36  ;;  %405 = vst.msk [vmem:[%s593_s30 + $0x60] sm:$0xff] %vm392_vm2, %v388_v38  ;;  %v315_v43 = vpop.f32.mrf.mxu2 }
  0x9b   : > { %v377_v41 = vmax.f32 %v361_v39, 0.0  ;;  %v327_v44 = vpop.f32.mrf.mxu3  ;;  %v349_v45 = vmul.f32 %v577_v17, %v315_v43 }
  0x9c   : > { %v381_v42 = vmax.f32 %v365_v40, 0.0  ;;  %v353_v46 = vmul.f32 %v577_v17, %v327_v44 }
  0x9d   : > { %394 = vst.msk [vmem:[%s593_s30 + $0x8] sm:$0xff] %vm392_vm2, %v377_v41  ;;  %v369_v47 = vadd.f32 %v582_v18, %v349_v45 }
  0x9e   : > { %398 = vst.msk [vmem:[%s593_s30 + $0x28] sm:$0xff] %vm392_vm2, %v381_v42  ;;  %v373_v48 = vadd.f32 %v582_v18, %v353_v46  ;;  %v294_v49 = vpop.f32.mrf.mxu0 }
  0x9f   : > { %v306_v50 = vpop.f32.mrf.mxu1  ;;  %v342_v51 = vmul.f32 %v577_v17, %v294_v49  ;;  %v385_v53 = vmax.f32 %v369_v47, 0.0 }
  0xa0   : > { %v346_v52 = vmul.f32 %v577_v17, %v306_v50  ;;  %v389_v54 = vmax.f32 %v373_v48, 0.0 }
  0xa1   : > { %v362_v55 = vadd.f32 %v582_v18, %v342_v51  ;;  %402 = vst.msk [vmem:[%s593_s30 + $0x48] sm:$0xff] %vm392_vm2, %v385_v53 }
  0xa2   : > { %v366_v56 = vadd.f32 %v582_v18, %v346_v52  ;;  %406 = vst.msk [vmem:[%s593_s30 + $0x68] sm:$0xff] %vm392_vm2, %v389_v54  ;;  %v318_v59 = vpop.f32.mrf.mxu2 }
  0xa3   : > { %v378_v57 = vmax.f32 %v362_v55, 0.0  ;;  %v330_v60 = vpop.f32.mrf.mxu3  ;;  %v350_v61 = vmul.f32 %v577_v17, %v318_v59 }
  0xa4   : > { %v382_v58 = vmax.f32 %v366_v56, 0.0  ;;  %v354_v62 = vmul.f32 %v577_v17, %v330_v60 }
  0xa5   : > { %395 = vst.msk [vmem:[%s593_s30 + $0x10] sm:$0xff] %vm392_vm2, %v378_v57  ;;  %v370_v63 = vadd.f32 %v582_v18, %v350_v61 }
  0xa6   : > { %399 = vst.msk [vmem:[%s593_s30 + $0x30] sm:$0xff] %vm392_vm2, %v382_v58  ;;  %v374_v0 = vadd.f32 %v582_v18, %v354_v62  ;;  %v297_v1 = vpop.f32.mrf.mxu0 }
  0xa7   : > { %v309_v2 = vpop.f32.mrf.mxu1  ;;  %v343_v3 = vmul.f32 %v577_v17, %v297_v1  ;;  %v386_v5 = vmax.f32 %v370_v63, 0.0 }
  0xa8   : > { %v347_v4 = vmul.f32 %v577_v17, %v309_v2  ;;  %v390_v6 = vmax.f32 %v374_v0, 0.0 }
  0xa9   : > { %v363_v7 = vadd.f32 %v582_v18, %v343_v3  ;;  %403 = vst.msk [vmem:[%s593_s30 + $0x50] sm:$0xff] %vm392_vm2, %v386_v5 }
  0xaa   : > { %v367_v8 = vadd.f32 %v582_v18, %v347_v4  ;;  %407 = vst.msk [vmem:[%s593_s30 + $0x70] sm:$0xff] %vm392_vm2, %v390_v6  ;;  %v321_v11 = vpop.f32.mrf.mxu2 }
  0xab   : > { %v379_v9 = vmax.f32 %v363_v7, 0.0  ;;  %v333_v12 = vpop.f32.mrf.mxu3  ;;  %v351_v13 = vmul.f32 %v577_v17, %v321_v11 }
  0xac   : > { %v383_v10 = vmax.f32 %v367_v8, 0.0  ;;  %v355_v14 = vmul.f32 %v577_v17, %v333_v12 }
  0xad   : > { %396 = vst.msk [vmem:[%s593_s30 + $0x18] sm:$0xff] %vm392_vm2, %v379_v9  ;;  %v371_v15 = vadd.f32 %v582_v18, %v351_v13 }
  0xae   : > { %400 = vst.msk [vmem:[%s593_s30 + $0x38] sm:$0xff] %vm392_vm2, %v383_v10  ;;  %v375_v16 = vadd.f32 %v582_v18, %v355_v14 }
  0xaf   : > { %v387_v19 = vmax.f32 %v371_v15, 0.0 }
  0xb0   : > { %v391_v20 = vmax.f32 %v375_v16, 0.0 }
  0xb1   : > { %404 = vst.msk [vmem:[%s593_s30 + $0x58] sm:$0xff] %vm392_vm2, %v387_v19 }
  0xb2   : > { %408 = vst.msk [vmem:[%s593_s30 + $0x78] sm:$0xff] %vm392_vm2, %v391_v20 }
  0xb3 PF: > { %s14_s15 = sadd.s32 1, %s512_s15  }
  0xb4   : > { %p11_p4 = scmp.ge.s32.totalorder %s14_s15, 6  }
  0xb6   :  { %13 = sbr.rel (!%p11_p4) target bundleno = 1 (0x1), region = 66 }

</bundles_post_ra>
